<compile_context>
chip_gen: v6e
topology: v6e:2x2x1
jax: 0.10.0
libtpu: 0.0.40
codegen_flags: <defaults>
</compile_context>

<pallas_src>
import functools
import math

import jax
import jax.numpy as jnp
from jax.experimental import pallas as pl
from jax.experimental.pallas import tpu as pltpu


# --------------------------------------------------------------------------
# kernels
# --------------------------------------------------------------------------
def kv_proj_kernel(k_ref, v_ref, wk_ref, bk_ref, wv_ref, bv_ref, kp_ref, vp_ref):
    """Full-width K/V projections, computed once per (batch, Sk-tile)."""
    f32 = jnp.float32
    kp_ref[0] = (jnp.dot(k_ref[0], wk_ref[...], preferred_element_type=f32)
                 + bk_ref[...]).astype(kp_ref.dtype)
    vp_ref[0] = (jnp.dot(v_ref[0], wv_ref[...], preferred_element_type=f32)
                 + bv_ref[...]).astype(vp_ref.dtype)


def mha_kernel(q_ref, kp_ref, vp_ref, mask_ref, wq_ref, bq_ref, wo_ref, bo_ref,
               o_ref, attn_ref, q_scr, *, n_heads, head_dim, compute_dtype):
    f32 = jnp.float32

    # Full-width Q projection; 1/sqrt(head_dim) is already folded into wq/bq.
    q_scr[...] = (jnp.dot(q_ref[0], wq_ref[...], preferred_element_type=f32)
                  + bq_ref[...])                                   # (TQ, H) f32

    # Additive key-mask bias, hoisted out of the head loop
    # (== masked_fill(mask == 0, -1e10) followed by softmax).
    bias = jnp.where(mask_ref[0] != 0, f32(0.0), f32(-1e10))       # (1, Sk)

    tq = q_ref.shape[1]
    out_acc = jnp.zeros((tq, n_heads * head_dim), f32)

    # TODO(synk): for n_heads >= 8 switch to lax.fori_loop over heads to bound
    # live ranges / avoid vreg spills.
    for h in range(n_heads):
        lo, hi = h * head_dim, (h + 1) * head_dim
        qh = q_scr[:, lo:hi].astype(compute_dtype)                 # (TQ, hd)
        kh = kp_ref[0, :, lo:hi]                                   # (Sk, hd) pre-projected
        vh = vp_ref[0, :, lo:hi]                                   # (Sk, hd) pre-projected

        # energy = qh @ kh^T without materializing a transpose.
        energy = jax.lax.dot_general(
            qh, kh, dimension_numbers=(((1,), (1,)), ((), ())),
            preferred_element_type=f32) + bias                     # (TQ, Sk) f32

        # softmax in f32; exact reciprocal because attention is an exported output.
        m = jnp.max(energy, axis=-1, keepdims=True)
        e = jnp.exp(energy - m)
        attn = e * pl.reciprocal(jnp.sum(e, axis=-1, keepdims=True), approx=False)
        attn_ref[0, h] = attn.astype(attn_ref.dtype)

        # TODO(synk): nn.Dropout on the attention weights is identity here
        # (inference / eval semantics).
        ctx = jnp.dot(attn.astype(compute_dtype), vh,
                      preferred_element_type=f32)                  # (TQ, hd)
        # Output projection accumulated per head (row-block of wo) -> no concat.
        out_acc = out_acc + jnp.dot(ctx.astype(compute_dtype), wo_ref[h],
                                    preferred_element_type=f32)

    o_ref[0] = (out_acc + bo_ref[...]).astype(o_ref.dtype)


# --------------------------------------------------------------------------
# helpers
# --------------------------------------------------------------------------
def _vmem_limit(entries, margin=8 << 20):
    """Sum of (shape, dtype, n_buffers) block bytes, clamped to a size that fits
    every target generation (v7x TensorCore = 64 MiB physical VMEM)."""
    total = sum(math.prod(s) * jnp.dtype(d).itemsize * n for s, d, n in entries)
    return int(min(max(total + margin, 16 << 20), 48 << 20))


def _spec(block_shape, index_map, single_buffer):
    """BlockSpec, single-buffered when requested (grid-invariant blocks)."""
    if single_buffer:
        return pl.BlockSpec(block_shape, index_map, pipeline_mode=pl.Buffered(1))
    return pl.BlockSpec(block_shape, index_map)


def _kv_projection(key_c, value_c, wk, bk, wv, bv, *, kv_block, single_buffer):
    B, Sk, H = key_c.shape
    cdt = key_c.dtype
    ts = min(kv_block, Sk)
    grid = (B, pl.cdiv(Sk, ts))
    nbuf = 1 if single_buffer else 2

    x_spec = pl.BlockSpec((1, ts, H), lambda b, s: (b, s, 0))
    w2 = _spec((H, H), lambda b, s: (0, 0), single_buffer)
    b2 = _spec((1, H), lambda b, s: (0, 0), single_buffer)

    vmem = _vmem_limit(
        [((1, ts, H), cdt, 2)] * 4
        + [((H, H), cdt, nbuf)] * 2
        + [((1, H), jnp.float32, nbuf)] * 2)

    return pl.pallas_call(
        kv_proj_kernel,
        out_shape=(jax.ShapeDtypeStruct((B, Sk, H), cdt),
                   jax.ShapeDtypeStruct((B, Sk, H), cdt)),
        grid_spec=pltpu.PrefetchScalarGridSpec(
            num_scalar_prefetch=0,
            grid=grid,
            in_specs=[x_spec, x_spec, w2, b2,
                      _spec((H, H), lambda b, s: (0, 0), single_buffer),
                      _spec((1, H), lambda b, s: (0, 0), single_buffer)],
            out_specs=(pl.BlockSpec((1, ts, H), lambda b, s: (b, s, 0)),
                       pl.BlockSpec((1, ts, H), lambda b, s: (b, s, 0))),
        ),
        compiler_params=pltpu.CompilerParams(
            dimension_semantics=("parallel", "parallel"),
            vmem_limit_bytes=vmem),
    )(key_c, value_c, wk, bk, wv, bv)


def _attention(query_c, k_proj, v_proj, mask_i, wq, bq, wo, bo, *,
               n_heads, head_dim, compute_dtype, attn_dtype, out_dtype,
               q_block, single_buffer):
    B, Sq, H = query_c.shape
    Sk = k_proj.shape[1]
    tq = min(q_block, Sq)
    grid = (B, pl.cdiv(Sq, tq))       # padded/masked last tile if Sq % tq != 0
    nbuf = 1 if single_buffer else 2

    vmem = _vmem_limit([
        ((1, tq, H), compute_dtype, 2),
        ((1, Sk, H), compute_dtype, nbuf), ((1, Sk, H), compute_dtype, nbuf),
        ((1, 1, Sk), jnp.int32, nbuf),
        ((H, H), compute_dtype, nbuf), ((1, H), jnp.float32, nbuf),
        ((n_heads, head_dim, H), compute_dtype, nbuf), ((1, H), jnp.float32, nbuf),
        ((1, tq, H), out_dtype, 2),
        ((1, n_heads, tq, Sk), attn_dtype, 2),
        ((tq, H), jnp.float32, 1),
    ])

    kernel = functools.partial(mha_kernel, n_heads=n_heads, head_dim=head_dim,
                               compute_dtype=compute_dtype)

    return pl.pallas_call(
        kernel,
        out_shape=(jax.ShapeDtypeStruct((B, Sq, H), out_dtype),
                   jax.ShapeDtypeStruct((B, n_heads, Sq, Sk), attn_dtype)),
        grid_spec=pltpu.PrefetchScalarGridSpec(
            num_scalar_prefetch=0,
            grid=grid,
            in_specs=[
                pl.BlockSpec((1, tq, H), lambda b, qi: (b, qi, 0)),          # query tile
                _spec((1, Sk, H), lambda b, qi: (b, 0, 0), single_buffer),   # K_proj
                _spec((1, Sk, H), lambda b, qi: (b, 0, 0), single_buffer),   # V_proj
                _spec((1, 1, Sk), lambda b, qi: (b, 0, 0), single_buffer),   # key mask
                _spec((H, H), lambda b, qi: (0, 0), single_buffer),          # wq (scaled)
                _spec((1, H), lambda b, qi: (0, 0), single_buffer),          # bq (scaled)
                _spec((n_heads, head_dim, H), lambda b, qi: (0, 0, 0), single_buffer),  # wo
                _spec((1, H), lambda b, qi: (0, 0), single_buffer),          # bo
            ],
            out_specs=(
                pl.BlockSpec((1, tq, H), lambda b, qi: (b, qi, 0)),
                pl.BlockSpec((1, n_heads, tq, Sk), lambda b, qi: (b, 0, qi, 0)),
            ),
            scratch_shapes=[pltpu.VMEM((tq, H), jnp.float32)],               # projected Q
        ),
        compiler_params=pltpu.CompilerParams(
            dimension_semantics=("parallel", "parallel"),
            vmem_limit_bytes=vmem),
    )(query_c, k_proj, v_proj, mask_i, wq, bq, wo, bo)


# --------------------------------------------------------------------------
# public wrapper
# --------------------------------------------------------------------------
def multi_head_attention(query, key, value, mask, params, *, n_heads,
                         compute_dtype=jnp.bfloat16, attn_dtype=None,
                         q_block=256, kv_block=512):
    B, Sq, H = query.shape
    Bk, Sk, Hk = key.shape
    assert value.shape == key.shape and Bk == B and Hk == H
    assert H % n_heads == 0
    head_dim = H // n_heads
    out_dtype = query.dtype
    f32 = jnp.float32
    if attn_dtype is None:
        # bf16 attention writeback on the perf path (~0.4% rounding on an
        # exported tensor); pass jnp.float32 for exact PyTorch dtype parity.
        attn_dtype = compute_dtype

    # Activations travel to HBM/VMEM in compute_dtype (halves DMA bytes on bf16 path).
    query_c = query.astype(compute_dtype)
    key_c = key.astype(compute_dtype)
    value_c = value.astype(compute_dtype)

    # TODO(synk): only a (B, Sk) key-padding mask is supported, not arbitrary
    # broadcastable masks (e.g. causal (Sq, Sk)) as in the PyTorch masked_fill.
    if mask is None:
        mask = jnp.ones((B, Sk), jnp.int32)
    mask_i = jnp.asarray(mask).astype(jnp.int32).reshape(B, 1, Sk)

    # One-time weight relayout: fold 1/sqrt(head_dim) into the Q projection,
    # keep wq/wk/wv full-width (H,H) for lane-dense MXU matmuls, and make wo
    # head-major (nH, hd, H) so the output projection accumulates per head.
    inv_scale = f32(1.0 / math.sqrt(head_dim))
    wq = (params["wq"].astype(f32) * inv_scale).astype(compute_dtype)
    bq = params["bq"].astype(f32) * inv_scale
    wk = params["wk"].astype(compute_dtype)
    bk = params["bk"].astype(f32)
    wv = params["wv"].astype(compute_dtype)
    bv = params["bv"].astype(f32)
    wo = params["wo"].reshape(n_heads, head_dim, H).astype(compute_dtype)
    bo = params["bo"].astype(f32)

    def run(single_buffer):
        # K/V projected once per batch element (not once per query tile).
        k_proj, v_proj = _kv_projection(key_c, value_c, wk, bk, wv, bv,
                                        kv_block=kv_block,
                                        single_buffer=single_buffer)
        return _attention(query_c, k_proj, v_proj, mask_i, wq, bq, wo, bo,
                          n_heads=n_heads, head_dim=head_dim,
                          compute_dtype=compute_dtype, attn_dtype=attn_dtype,
                          out_dtype=out_dtype, q_block=q_block,
                          single_buffer=single_buffer)

    try:
        return run(single_buffer=True)     # grid-invariant blocks single-buffered
    except Exception:
        # TODO(synk): pl.Buffered(1) pipeline_mode rejected by this jax build;
        # fall back to default double buffering (costs VMEM only).
        return run(single_buffer=False)


# --------------------------------------------------------------------------
# pure-JAX reference (PyTorch semantics, f32)
# --------------------------------------------------------------------------
def mha_ref(query, key, value, mask, params, *, n_heads):
    B, Sq, H = query.shape
    Sk = key.shape[1]
    hd = H // n_heads
    f32 = jnp.float32
    q = query.astype(f32) @ params["wq"] + params["bq"]
    k = key.astype(f32) @ params["wk"] + params["bk"]
    v = value.astype(f32) @ params["wv"] + params["bv"]

    def split(t, s):
        return t.reshape(B, s, n_heads, hd).transpose(0, 2, 1, 3)

    Q, K, V = split(q, Sq), split(k, Sk), split(v, Sk)
    energy = jnp.einsum("bhqd,bhkd->bhqk", Q, K) / jnp.sqrt(f32(hd))
    if mask is not None:
        energy = jnp.where(mask[:, None, None, :] == 0, f32(-1e10), energy)
    attn = jax.nn.softmax(energy, axis=-1)
    ctx = jnp.einsum("bhqk,bhkd->bhqd", attn, V)
    ctx = ctx.transpose(0, 2, 1, 3).reshape(B, Sq, H)
    x = ctx @ params["wo"] + params["bo"]
    return x, attn


def init_params(key, hidden_dim, w_scale=0.1):
    ks = jax.random.split(key, 8)
    n = lambda k, shape: jax.random.normal(k, shape, jnp.float32) * w_scale
    return {
        "wq": n(ks[0], (hidden_dim, hidden_dim)),
        "wk": n(ks[1], (hidden_dim, hidden_dim)),
        "wv": n(ks[2], (hidden_dim, hidden_dim)),
        "wo": n(ks[3], (hidden_dim, hidden_dim)),
        "bq": n(ks[4], (1, hidden_dim)),
        "bk": n(ks[5], (1, hidden_dim)),
        "bv": n(ks[6], (1, hidden_dim)),
        "bo": n(ks[7], (1, hidden_dim)),
    }


if __name__ == "__main__":
    root = jax.random.PRNGKey(0)

    # ---- small shape, f32 verification path (matches PyTorch numerics) ----
    B, SQ, SK, H, N_HEADS = 2, 8, 8, 32, 4
    kq, kk, kv, kp, k2 = jax.random.split(root, 5)
    query = jax.random.normal(kq, (B, SQ, H), jnp.float32)
    key_t = jax.random.normal(kk, (B, SK, H), jnp.float32)
    value = jax.random.normal(kv, (B, SK, H), jnp.float32)
    mask = jnp.ones((B, SK), jnp.int32).at[1, -2:].set(0)
    params = init_params(kp, H)

    ref_x, ref_attn = mha_ref(query, key_t, value, mask, params, n_heads=N_HEADS)

    x32, a32 = multi_head_attention(query, key_t, value, mask, params,
                                    n_heads=N_HEADS, compute_dtype=jnp.float32)
    jax.block_until_ready((x32, a32))
    assert x32.shape == (B, SQ, H) and a32.shape == (B, N_HEADS, SQ, SK)
    assert jnp.allclose(x32, ref_x, atol=1e-4, rtol=1e-4), "f32 output mismatch"
    assert jnp.allclose(a32, ref_attn, atol=1e-4, rtol=1e-4), "f32 attention mismatch"

    # ---- same shape, bf16-operand / f32-accumulate performance path ----
    xbf, abf = multi_head_attention(query, key_t, value, mask, params,
                                    n_heads=N_HEADS, compute_dtype=jnp.bfloat16)
    jax.block_until_ready((xbf, abf))
    assert jnp.allclose(xbf, ref_x, atol=5e-2, rtol=5e-2), "bf16 output mismatch"
    assert jnp.allclose(abf.astype(jnp.float32), ref_attn,
                        atol=5e-2, rtol=5e-2), "bf16 attention mismatch"

    # ---- larger shape: exercises the query-tile grid axis (grid = (B, Sq/128)) ----
    B2, S2, H2, NH2 = 2, 256, 128, 4
    k2q, k2k, k2v, k2p = jax.random.split(k2, 4)
    q2 = jax.random.normal(k2q, (B2, S2, H2), jnp.float32)
    kk2 = jax.random.normal(k2k, (B2, S2, H2), jnp.float32)
    v2 = jax.random.normal(k2v, (B2, S2, H2), jnp.float32)
    mask2 = jnp.ones((B2, S2), jnp.int32).at[0, -37:].set(0)
    params2 = init_params(k2p, H2, w_scale=0.05)

    ref2_x, _ = mha_ref(q2, kk2, v2, mask2, params2, n_heads=NH2)
    x2, a2 = multi_head_attention(q2, kk2, v2, mask2, params2,
                                  n_heads=NH2, compute_dtype=jnp.bfloat16,
                                  q_block=128)
    jax.block_until_ready((x2, a2))
    assert x2.shape == (B2, S2, H2) and a2.shape == (B2, NH2, S2, S2)
    assert jnp.allclose(x2, ref2_x, atol=5e-2, rtol=5e-2), "tiled bf16 output mismatch"

    print("KERNEL_OK")
</pallas_src>

<mosaic_0001>
module attributes {stable_mosaic.version = 11 : i64} {
  func.func @kv_proj_kernel(%arg0: i32, %arg1: i32, %arg2: memref<1x8x32xf32, #tpu.memory_space<vmem>>, %arg3: memref<1x8x32xf32, #tpu.memory_space<vmem>>, %arg4: memref<32x32xf32, #tpu.memory_space<vmem>>, %arg5: memref<1x32xf32, #tpu.memory_space<vmem>>, %arg6: memref<32x32xf32, #tpu.memory_space<vmem>>, %arg7: memref<1x32xf32, #tpu.memory_space<vmem>>, %arg8: memref<1x8x32xf32, #tpu.memory_space<vmem>>, %arg9: memref<1x8x32xf32, #tpu.memory_space<vmem>>) attributes {dimension_semantics = [#tpu.dimension_semantics<parallel>, #tpu.dimension_semantics<parallel>], iteration_bounds = array<i64: 2, 1>, scalar_prefetch = 0 : i64, scratch_operands = 0 : i64, tpu.core_type = #tpu.core_type<tc>, window_params = [{transform_indices = @transform_0, window_bounds = array<i64: 1, 8, 32>}, {transform_indices = @transform_1, window_bounds = array<i64: 1, 8, 32>}, {pipeline_mode = #tpu.pipeline_mode<synchronous>, transform_indices = @transform_2, window_bounds = array<i64: 32, 32>}, {pipeline_mode = #tpu.pipeline_mode<synchronous>, transform_indices = @transform_3, window_bounds = array<i64: 1, 32>}, {pipeline_mode = #tpu.pipeline_mode<synchronous>, transform_indices = @transform_4, window_bounds = array<i64: 32, 32>}, {pipeline_mode = #tpu.pipeline_mode<synchronous>, transform_indices = @transform_5, window_bounds = array<i64: 1, 32>}, {transform_indices = @transform_6, window_bounds = array<i64: 1, 8, 32>}, {transform_indices = @transform_7, window_bounds = array<i64: 1, 8, 32>}]} {
    %c0 = arith.constant 0 : index
    %c0_0 = arith.constant 0 : index
    %c0_1 = arith.constant 0 : index
    %0 = vector.load %arg2[%c0, %c0_0, %c0_1] : memref<1x8x32xf32, #tpu.memory_space<vmem>>, vector<1x8x32xf32>
    %1 = vector.shape_cast %0 : vector<1x8x32xf32> to vector<8x32xf32>
    %c0_2 = arith.constant 0 : index
    %c0_3 = arith.constant 0 : index
    %2 = vector.load %arg4[%c0_2, %c0_3] : memref<32x32xf32, #tpu.memory_space<vmem>>, vector<32x32xf32>
    %cst = arith.constant dense<0.000000e+00> : vector<8x32xf32>
    %3 = tpu.matmul %1, %2, %cst {dimension_numbers = #tpu.dot_dimension_numbers<[1], [0], [0], [1], [0, 0, 1, 1], [], []>} : vector<8x32xf32>, vector<32x32xf32>, vector<8x32xf32> -> vector<8x32xf32>
    %c0_4 = arith.constant 0 : index
    %c0_5 = arith.constant 0 : index
    %4 = vector.load %arg5[%c0_4, %c0_5] : memref<1x32xf32, #tpu.memory_space<vmem>>, vector<1x32xf32>
    %5 = vector.broadcast %4 : vector<1x32xf32> to vector<8x32xf32>
    %6 = arith.addf %3, %5 : vector<8x32xf32>
    %c0_6 = arith.constant 0 : index
    %c0_7 = arith.constant 0 : index
    %c0_8 = arith.constant 0 : index
    %7 = vector.load %arg8[%c0_6, %c0_7, %c0_8] : memref<1x8x32xf32, #tpu.memory_space<vmem>>, vector<1x8x32xf32>
    %8 = vector.shape_cast %7 : vector<1x8x32xf32> to vector<8x32xf32>
    %9 = vector.shape_cast %6 : vector<8x32xf32> to vector<1x8x32xf32>
    tpu.vector_store %arg8[%c0_6, %c0_7, %c0_8], %9 {strides = array<i32>} : memref<1x8x32xf32, #tpu.memory_space<vmem>>, vector<1x8x32xf32>,
    %c0_9 = arith.constant 0 : index
    %c0_10 = arith.constant 0 : index
    %c0_11 = arith.constant 0 : index
    %10 = vector.load %arg3[%c0_9, %c0_10, %c0_11] : memref<1x8x32xf32, #tpu.memory_space<vmem>>, vector<1x8x32xf32>
    %11 = vector.shape_cast %10 : vector<1x8x32xf32> to vector<8x32xf32>
    %c0_12 = arith.constant 0 : index
    %c0_13 = arith.constant 0 : index
    %12 = vector.load %arg6[%c0_12, %c0_13] : memref<32x32xf32, #tpu.memory_space<vmem>>, vector<32x32xf32>
    %cst_14 = arith.constant dense<0.000000e+00> : vector<8x32xf32>
    %13 = tpu.matmul %11, %12, %cst_14 {dimension_numbers = #tpu.dot_dimension_numbers<[1], [0], [0], [1], [0, 0, 1, 1], [], []>} : vector<8x32xf32>, vector<32x32xf32>, vector<8x32xf32> -> vector<8x32xf32>
    %c0_15 = arith.constant 0 : index
    %c0_16 = arith.constant 0 : index
    %14 = vector.load %arg7[%c0_15, %c0_16] : memref<1x32xf32, #tpu.memory_space<vmem>>, vector<1x32xf32>
    %15 = vector.broadcast %14 : vector<1x32xf32> to vector<8x32xf32>
    %16 = arith.addf %13, %15 : vector<8x32xf32>
    %c0_17 = arith.constant 0 : index
    %c0_18 = arith.constant 0 : index
    %c0_19 = arith.constant 0 : index
    %17 = vector.load %arg9[%c0_17, %c0_18, %c0_19] : memref<1x8x32xf32, #tpu.memory_space<vmem>>, vector<1x8x32xf32>
    %18 = vector.shape_cast %17 : vector<1x8x32xf32> to vector<8x32xf32>
    %19 = vector.shape_cast %16 : vector<8x32xf32> to vector<1x8x32xf32>
    tpu.vector_store %arg9[%c0_17, %c0_18, %c0_19], %19 {strides = array<i32>} : memref<1x8x32xf32, #tpu.memory_space<vmem>>, vector<1x8x32xf32>,
    return
  }
  func.func @transform_0(%arg0: i32, %arg1: i32) -> (i32, i32, i32) {
    %c0_i32 = arith.constant 0 : i32
    %c0_i32_0 = arith.constant 0 : i32
    return %arg0, %arg1, %c0_i32 : i32, i32, i32
  }
  func.func @transform_1(%arg0: i32, %arg1: i32) -> (i32, i32, i32) {
    %c0_i32 = arith.constant 0 : i32
    %c0_i32_0 = arith.constant 0 : i32
    return %arg0, %arg1, %c0_i32 : i32, i32, i32
  }
  func.func @transform_2(%arg0: i32, %arg1: i32) -> (i32, i32) {
    %c0_i32 = arith.constant 0 : i32
    %c0_i32_0 = arith.constant 0 : i32
    %c0_i32_1 = arith.constant 0 : i32
    return %c0_i32, %c0_i32_0 : i32, i32
  }
  func.func @transform_3(%arg0: i32, %arg1: i32) -> (i32, i32) {
    %c0_i32 = arith.constant 0 : i32
    %c0_i32_0 = arith.constant 0 : i32
    %c0_i32_1 = arith.constant 0 : i32
    return %c0_i32, %c0_i32_0 : i32, i32
  }
  func.func @transform_4(%arg0: i32, %arg1: i32) -> (i32, i32) {
    %c0_i32 = arith.constant 0 : i32
    %c0_i32_0 = arith.constant 0 : i32
    %c0_i32_1 = arith.constant 0 : i32
    return %c0_i32, %c0_i32_0 : i32, i32
  }
  func.func @transform_5(%arg0: i32, %arg1: i32) -> (i32, i32) {
    %c0_i32 = arith.constant 0 : i32
    %c0_i32_0 = arith.constant 0 : i32
    %c0_i32_1 = arith.constant 0 : i32
    return %c0_i32, %c0_i32_0 : i32, i32
  }
  func.func @transform_6(%arg0: i32, %arg1: i32) -> (i32, i32, i32) {
    %c0_i32 = arith.constant 0 : i32
    %c0_i32_0 = arith.constant 0 : i32
    return %arg0, %arg1, %c0_i32 : i32, i32, i32
  }
  func.func @transform_7(%arg0: i32, %arg1: i32) -> (i32, i32, i32) {
    %c0_i32 = arith.constant 0 : i32
    %c0_i32_0 = arith.constant 0 : i32
    return %arg0, %arg1, %c0_i32 : i32, i32, i32
  }
}

module attributes {stable_mosaic.version = 11 : i64} {
  func.func @kv_proj_kernel(%arg0: i32, %arg1: i32, %arg2: memref<1x8x32xf32, #tpu.memory_space<vmem>>, %arg3: memref<1x8x32xf32, #tpu.memory_space<vmem>>, %arg4: memref<32x32xf32, #tpu.memory_space<vmem>>, %arg5: memref<1x32xf32, #tpu.memory_space<vmem>>, %arg6: memref<32x32xf32, #tpu.memory_space<vmem>>, %arg7: memref<1x32xf32, #tpu.memory_space<vmem>>, %arg8: memref<1x8x32xf32, #tpu.memory_space<vmem>>, %arg9: memref<1x8x32xf32, #tpu.memory_space<vmem>>) attributes {dimension_semantics = [#tpu.dimension_semantics<parallel>, #tpu.dimension_semantics<parallel>], iteration_bounds = array<i64: 2, 1>, scalar_prefetch = 0 : i64, scratch_operands = 0 : i64, tpu.core_type = #tpu.core_type<tc>, window_params = [{transform_indices = @transform_0, window_bounds = array<i64: 1, 8, 32>}, {transform_indices = @transform_1, window_bounds = array<i64: 1, 8, 32>}, {pipeline_mode = #tpu.pipeline_mode<synchronous>, transform_indices = @transform_2, window_bounds = array<i64: 32, 32>}, {pipeline_mode = #tpu.pipeline_mode<synchronous>, transform_indices = @transform_3, window_bounds = array<i64: 1, 32>}, {pipeline_mode = #tpu.pipeline_mode<synchronous>, transform_indices = @transform_4, window_bounds = array<i64: 32, 32>}, {pipeline_mode = #tpu.pipeline_mode<synchronous>, transform_indices = @transform_5, window_bounds = array<i64: 1, 32>}, {transform_indices = @transform_6, window_bounds = array<i64: 1, 8, 32>}, {transform_indices = @transform_7, window_bounds = array<i64: 1, 8, 32>}]} {
    %c0 = arith.constant 0 : index
    %c0_0 = arith.constant 0 : index
    %c0_1 = arith.constant 0 : index
    %0 = vector.load %arg2[%c0, %c0_0, %c0_1] : memref<1x8x32xf32, #tpu.memory_space<vmem>>, vector<1x8x32xf32>
    %1 = vector.shape_cast %0 : vector<1x8x32xf32> to vector<8x32xf32>
    %c0_2 = arith.constant 0 : index
    %c0_3 = arith.constant 0 : index
    %2 = vector.load %arg4[%c0_2, %c0_3] : memref<32x32xf32, #tpu.memory_space<vmem>>, vector<32x32xf32>
    %cst = arith.constant dense<0.000000e+00> : vector<8x32xf32>
    %3 = tpu.matmul %1, %2, %cst {dimension_numbers = #tpu.dot_dimension_numbers<[1], [0], [0], [1], [0, 0, 1, 1], [], []>} : vector<8x32xf32>, vector<32x32xf32>, vector<8x32xf32> -> vector<8x32xf32>
    %c0_4 = arith.constant 0 : index
    %c0_5 = arith.constant 0 : index
    %4 = vector.load %arg5[%c0_4, %c0_5] : memref<1x32xf32, #tpu.memory_space<vmem>>, vector<1x32xf32>
    %5 = vector.broadcast %4 : vector<1x32xf32> to vector<8x32xf32>
    %6 = arith.addf %3, %5 : vector<8x32xf32>
    %c0_6 = arith.constant 0 : index
    %c0_7 = arith.constant 0 : index
    %c0_8 = arith.constant 0 : index
    %7 = vector.load %arg8[%c0_6, %c0_7, %c0_8] : memref<1x8x32xf32, #tpu.memory_space<vmem>>, vector<1x8x32xf32>
    %8 = vector.shape_cast %7 : vector<1x8x32xf32> to vector<8x32xf32>
    %9 = vector.shape_cast %6 : vector<8x32xf32> to vector<1x8x32xf32>
    tpu.vector_store %arg8[%c0_6, %c0_7, %c0_8], %9 {strides = array<i32>} : memref<1x8x32xf32, #tpu.memory_space<vmem>>, vector<1x8x32xf32>,
    %c0_9 = arith.constant 0 : index
    %c0_10 = arith.constant 0 : index
    %c0_11 = arith.constant 0 : index
    %10 = vector.load %arg3[%c0_9, %c0_10, %c0_11] : memref<1x8x32xf32, #tpu.memory_space<vmem>>, vector<1x8x32xf32>
    %11 = vector.shape_cast %10 : vector<1x8x32xf32> to vector<8x32xf32>
    %c0_12 = arith.constant 0 : index
    %c0_13 = arith.constant 0 : index
    %12 = vector.load %arg6[%c0_12, %c0_13] : memref<32x32xf32, #tpu.memory_space<vmem>>, vector<32x32xf32>
    %cst_14 = arith.constant dense<0.000000e+00> : vector<8x32xf32>
    %13 = tpu.matmul %11, %12, %cst_14 {dimension_numbers = #tpu.dot_dimension_numbers<[1], [0], [0], [1], [0, 0, 1, 1], [], []>} : vector<8x32xf32>, vector<32x32xf32>, vector<8x32xf32> -> vector<8x32xf32>
    %c0_15 = arith.constant 0 : index
    %c0_16 = arith.constant 0 : index
    %14 = vector.load %arg7[%c0_15, %c0_16] : memref<1x32xf32, #tpu.memory_space<vmem>>, vector<1x32xf32>
    %15 = vector.broadcast %14 : vector<1x32xf32> to vector<8x32xf32>
    %16 = arith.addf %13, %15 : vector<8x32xf32>
    %c0_17 = arith.constant 0 : index
    %c0_18 = arith.constant 0 : index
    %c0_19 = arith.constant 0 : index
    %17 = vector.load %arg9[%c0_17, %c0_18, %c0_19] : memref<1x8x32xf32, #tpu.memory_space<vmem>>, vector<1x8x32xf32>
    %18 = vector.shape_cast %17 : vector<1x8x32xf32> to vector<8x32xf32>
    %19 = vector.shape_cast %16 : vector<8x32xf32> to vector<1x8x32xf32>
    tpu.vector_store %arg9[%c0_17, %c0_18, %c0_19], %19 {strides = array<i32>} : memref<1x8x32xf32, #tpu.memory_space<vmem>>, vector<1x8x32xf32>,
    return
  }
  func.func @transform_0(%arg0: i32, %arg1: i32) -> (i32, i32, i32) {
    %c0_i32 = arith.constant 0 : i32
    %c0_i32_0 = arith.constant 0 : i32
    return %arg0, %arg1, %c0_i32 : i32, i32, i32
  }
  func.func @transform_1(%arg0: i32, %arg1: i32) -> (i32, i32, i32) {
    %c0_i32 = arith.constant 0 : i32
    %c0_i32_0 = arith.constant 0 : i32
    return %arg0, %arg1, %c0_i32 : i32, i32, i32
  }
  func.func @transform_2(%arg0: i32, %arg1: i32) -> (i32, i32) {
    %c0_i32 = arith.constant 0 : i32
    %c0_i32_0 = arith.constant 0 : i32
    %c0_i32_1 = arith.constant 0 : i32
    return %c0_i32, %c0_i32_0 : i32, i32
  }
  func.func @transform_3(%arg0: i32, %arg1: i32) -> (i32, i32) {
    %c0_i32 = arith.constant 0 : i32
    %c0_i32_0 = arith.constant 0 : i32
    %c0_i32_1 = arith.constant 0 : i32
    return %c0_i32, %c0_i32_0 : i32, i32
  }
  func.func @transform_4(%arg0: i32, %arg1: i32) -> (i32, i32) {
    %c0_i32 = arith.constant 0 : i32
    %c0_i32_0 = arith.constant 0 : i32
    %c0_i32_1 = arith.constant 0 : i32
    return %c0_i32, %c0_i32_0 : i32, i32
  }
  func.func @transform_5(%arg0: i32, %arg1: i32) -> (i32, i32) {
    %c0_i32 = arith.constant 0 : i32
    %c0_i32_0 = arith.constant 0 : i32
    %c0_i32_1 = arith.constant 0 : i32
    return %c0_i32, %c0_i32_0 : i32, i32
  }
  func.func @transform_6(%arg0: i32, %arg1: i32) -> (i32, i32, i32) {
    %c0_i32 = arith.constant 0 : i32
    %c0_i32_0 = arith.constant 0 : i32
    return %arg0, %arg1, %c0_i32 : i32, i32, i32
  }
  func.func @transform_7(%arg0: i32, %arg1: i32) -> (i32, i32, i32) {
    %c0_i32 = arith.constant 0 : i32
    %c0_i32_0 = arith.constant 0 : i32
    return %arg0, %arg1, %c0_i32 : i32, i32, i32
  }
}

</mosaic_0001>

<bundles_post_ra>
// kernel: tpu_custom_call.1
= control target key start
LH: loop header
LB: loop body
LE: loop exit
PB: predicated region body
PF: predicated region fallthrough
CT: control target
= control target key end

     0   :  { %s1448_s0 = inlined_call_operand.hbm [shape: f32[2,8,32], index: 0, kind: input, shape index: {}]   ;;  %s1449_s1 = inlined_call_operand.hbm [shape: f32[2,8,32], index: 1, kind: input, shape index: {}]   ;;  %s1450_s2 = inlined_call_operand.hbm [shape: f32[32,32], index: 2, kind: input, shape index: {}]   ;;  %s1451_s3 = inlined_call_operand.vmem [shape: f32[1,32], index: 3, kind: input, shape index: {}]   ;;  %s1452_s4 = inlined_call_operand.hbm [shape: f32[32,32], index: 4, kind: input, shape index: {}]   ;;  %s1453_s5 = inlined_call_operand.vmem [shape: f32[1,32], index: 5, kind: input, shape index: {}]   ;;  %s1454_s6 = inlined_call_operand.hbm [shape: f32[2,8,32], index: 6, kind: output, shape index: {0}]   ;;  %s1455_s7 = inlined_call_operand.hbm [shape: f32[2,8,32], index: 7, kind: output, shape index: {1}]  }
   0x1   :  { %1458 = sst [smem:[#allocation20_spill]] %s1448_s0 }
   0x2   :  { %1459 = sst [smem:[#allocation21_spill]] %s1449_s1 }
   0x3   :  { %1460 = sst [smem:[#allocation22_spill]] %s1450_s2 }
   0x4   :  { %1461 = sst [smem:[#allocation23_spill]] %s1452_s4 }
   0x5   :  { %13 = vsyncpa [#allocation3], 0 }
   0x6   :  { %15 = vsyncpa [#allocation3 + $0x1], 0 }
   0x7   :  { %16 = vsyncpa [#allocation6], 0 }
   0x8   :  { %18 = vsyncpa [#allocation6 + $0x1], 0 }
   0x9   :  { %19 = vsyncpa [#allocation9], 0 }
   0xa   :  { %20 = vsyncpa [#allocation4], 0 }
   0xb   :  { %22 = vsyncpa [#allocation4 + $0x1], 0 }
   0xc   :  { %23 = vsyncpa [#allocation12], 0 }
   0xd   :  { %25 = vsyncpa [#allocation12 + $0x1], 0  ;;  %s1194_s24 = smov 0   ;;  %s1196_s25 = smov 0  }
   0xe   :  { %s1198_s26 = smov 0   ;;  %s1200_s27 = smov 0  }
   0xf   :  { %s1202_s28 = smov 0   ;;  %s1204_s29 = smov 0  }
  0x10 LB: > { %s1225_s30 = sadd.s32 4294967295, %s1142_s29   ;;  %s757_s8 = sadd.s32 4294967294, %s1142_s29   ;;  %s1142_s29 = sphi %s1204_s29, %s31_s29   ;;  %s1138_s28 = sphi %s1202_s28, %s1485_s28   ;;  %s1134_s27 = sphi %s1200_s27, %s1484_s27   ;;  %s1130_s26 = sphi %s1198_s26, %s1483_s26   ;;  %s1126_s25 = sphi %s1196_s25, %s1482_s25   ;;  %s1122_s24 = sphi %s1194_s24, %s1481_s24  }
  0x11   : > { %p65_p0 = scmp.ne.s32.totalorder %s1126_s25, %s1122_s24  ;;  %p1456_p1 = scmp.eq.s32.totalorder %s1225_s30, 0 }
  0x12   : > { %p209_p3 = scmp.eq.s32.totalorder %s757_s8, 1  ;;  %p758_p5 = scmp.ge.s32.totalorder %s1142_s29, 1 }
  0x13   : > { %p1234_p4 = por %p1456_p1, %p65_p0  ;;  %p244_p7 = scmp.lt.s32.totalorder %s1142_s29, 3 }
  0x14   : > { %p1239_p6 = por %p209_p3, %p65_p0  ;;  %s1144_s12 = smov [#allocation7]  }
  0x15   : > { %p1244_p8 = pnand %p758_p5, %p244_p7  ;;  %s256_s13 = sshll.u32 %s1144_s12, 4  ;;  %s257_s13 = int_to_ptr.vmem [resolvable:$true] %s256_s13 }
  0x16   : > { %s1463_s10 = scalar_select %p1239_p6, 1, 0 }
  0x17   : > { %p831_p9 = pneg %p1244_p8  ;;  %s1145_s15 = smov [#allocation8]  }
  0x18   : > { %s272_s16 = sshll.u32 %s1145_s15, 4  ;;  %s923_s17 = scalar_lea.vmem %s257_s13, 512  ;;  %s273_s16 = int_to_ptr.vmem [resolvable:$true] %s272_s16 }
  0x19   : > { %p1253_p11 = pnand %p831_p9, %p1456_p1  ;;  %p924_p13 = scmp.ne.s32.totalorder %s257_s13, %s923_s17 }
  0x1a   : > { %p931_p5 = scmp.lt.s32.totalorder %s257_s13, %s257_s13  ;;  %p932_p7 = scmp.lt.s32.totalorder %s923_s17, %s923_s17 }
  0x1b   : > { %p914_p12 = pneg %p1253_p11 }
  0x1c   : > { %p933_p10 = por %p932_p7, %p931_p5 }
  0x1d   : > { %p926_p0 = pnand %p924_p13, %p914_p12 }
  0x1f   : > { %p927_p3 = pneg %p926_p0 }
  0x21   : > { %p934_p9 = pnand %p933_p10, %p927_p3 }
  0x23   : > { %937 = shalt.err (!%p934_p9)
}
  0x24   : > { %s1146_s18 = smov 128   ;;  %s1147_s19 = smov 8  }
  0x25   : > { %s1466_s2 = sld [smem:[#allocation22_spill]]  ;;  %s949_s22 = scalar_lea.vmem %s273_s16, 512 }
  0x26   : > { %p950_p1 = scmp.ne.s32.totalorder %s273_s16, %s949_s22  ;;  %p957_p2 = scmp.lt.s32.totalorder %s273_s16, %s273_s16 }
  0x27   : > { %p958_p6 = scmp.lt.s32.totalorder %s949_s22, %s949_s22 }
  0x28   : > { %p952_p13 = pnand %p950_p1, %p914_p12 }
  0x29   : > { %p959_p5 = por %p958_p6, %p957_p2 }
  0x2a   : > { %p953_p0 = pneg %p952_p13 }
  0x2b   : > { %834 = dma.hbm_to_vmem [thread:$0]  (!%p1253_p11), %s1466_s2, 512, %s257_s13, [#allocation6], %s1146_s18, %s1146_s18, %s1147_s19  }
  0x2c   : > { %p960_p10 = pnand %p959_p5, %p953_p0 }
  0x2e   : > { %963 = shalt.err (!%p960_p10)
}
  0x2f   : > { %s1467_s4 = sld [smem:[#allocation23_spill]]  ;;  %s43_s12 = sadd.s32 1, %s1138_s28 }
  0x30   : > { %s52_s13 = sadd.s32 1, %s1130_s26  ;;  %p45_p1 = scmp.ge.s32.totalorder %s43_s12, 2 }
  0x31   : > { %p59_p2 = scmp.ne.s32.totalorder %s1130_s26, %s1126_s25  ;;  %p60_p6 = scmp.eq.s32.totalorder %s1142_s29, 0 }
  0x32   : > { %p854_p12 = scmp.lt.s32.totalorder %s1142_s29, 2  ;;  %s1487_s12 = smov (%p45_p1, %s43_s12), 0 }
  0x33   : > { %1468 = sst [smem:[#allocation19_spill]] %s1487_s12  ;;  %p61_p3 = por %p60_p6, %p59_p2 }
  0x34   : > { %p1469_p7 = scmp.eq.s32.totalorder %s1225_s30, 1  ;;  %s47_s15 = ssub.s32 %s1138_s28, %s1487_s12 }
  0x35   : > { %837 = dma.hbm_to_vmem [thread:$0]  (!%p1253_p11), %s1467_s4, 512, %s273_s16, [#allocation9], %s1146_s18, %s1146_s18, %s1147_s19  }
  0x36   : > { %p1285_p9 = por %p1469_p7, %p59_p2  ;;  %s289_s17 = sand.u32 1, %s1130_s26  }
  0x37   : > { %p50_p13 = scmp.eq.s32.totalorder %s47_s15, 0  ;;  %s762_s16 = sshll.u32 %s289_s17, 3 }
  0x38   : > { %s763_s18 = sshll.u32 %s1138_s28, 7  ;;  %s1471_s0 = sld [smem:[#allocation20_spill]] }
  0x39   : > { %s1294_s19 = scalar_select %p50_p13, %s1130_s26, %s52_s13  }
  0x3a   : > { %s293_s23 = scalar_lea.vmem [#allocation2], %s762_s16  ;;  %p1301_p11 = pnand %p854_p12, %p61_p3 }
  0x3b   : > { %s301_s8 = sshll.u32 %s293_s23, 4  ;;  %s1473_s1 = sld [smem:[#allocation21_spill]]  ;;  %s302_s8 = int_to_ptr.vmem [resolvable:$true] %s301_s8 }
  0x3c   : > { %s290_s13 = scalar_lea.sflag [#allocation3], %s289_s17  ;;  %p966_p0 = pneg %p1301_p11 }
  0x3d   : > { %s977_s20 = scalar_lea.vmem %s302_s8, 128  ;;  %s1148_s21 = smov [#allocation2]  }
  0x3e   : > { %s299_s22 = scalar_lea.hbm %s1471_s0, %s763_s18  ;;  %p978_p5 = scmp.ne.s32.totalorder %s302_s8, %s977_s20 }
  0x3f   : > { %s982_s23 = sshll.u32 %s1148_s21, 4  ;;  %s983_s23 = int_to_ptr.vmem [resolvable:$false] %s982_s23 }
  0x40   : > { %p980_p10 = pnand %p978_p5, %p966_p0  ;;  %s984_s0 = scalar_lea.vmem %s983_s23, 256 }
  0x41   : > { %s1308_s12 = scalar_lea.hbm %s1473_s1, %s763_s18  ;;  %p985_p2 = scmp.lt.s32.totalorder %s302_s8, %s983_s23 }
  0x42   : > { %p981_p1 = pneg %p980_p10  ;;  %p986_p6 = scmp.lt.s32.totalorder %s984_s0, %s977_s20 }
  0x44   : > { %p987_p12 = por %p986_p6, %p985_p2 }
  0x46   : > { %p988_p3 = pnand %p987_p12, %p981_p1 }
  0x48   : > { %991 = shalt.err (!%p988_p3)
}
  0x49   : > { %841 = dma.hbm_to_vmem [thread:$0]  (!%p1301_p11), %s299_s22, 128, %s302_s8, %s290_s13  }
  0x4a   : > { %s308_s4 = sand.u32 1, %s1142_s29   ;;  %s312_s17 = scalar_lea.vmem [#allocation5], %s762_s16 }
  0x4b   : > { %s320_s18 = sshll.u32 %s312_s17, 4  ;;  %s309_s15 = scalar_lea.sflag [#allocation6], %s308_s4  ;;  %s321_s18 = int_to_ptr.vmem [resolvable:$true] %s320_s18 }
  0x4c   : > { %s1005_s1 = scalar_lea.vmem %s321_s18, 128  ;;  %s1149_s0 = smov [#allocation5]  }
  0x4d   : > { %p1006_p7 = scmp.ne.s32.totalorder %s321_s18, %s1005_s1  ;;  %s1010_s20 = sshll.u32 %s1149_s0, 4  ;;  %s1011_s20 = int_to_ptr.vmem [resolvable:$false] %s1010_s20 }
  0x4e   : > { %s1012_s21 = scalar_lea.vmem %s1011_s20, 256  ;;  %p1013_p10 = scmp.lt.s32.totalorder %s321_s18, %s1011_s20 }
  0x4f   : > { %p1008_p13 = pnand %p1006_p7, %p966_p0  ;;  %p1014_p1 = scmp.lt.s32.totalorder %s1012_s21, %s1005_s1 }
  0x51   : > { %p1009_p5 = pneg %p1008_p13  ;;  %p1015_p2 = por %p1014_p1, %p1013_p10 }
  0x53   : > { %p1016_p6 = pnand %p1015_p2, %p1009_p5 }
  0x55   : > { %1019 = shalt.err (!%p1016_p6)
}
  0x56   : > { %844 = dma.hbm_to_vmem [thread:$0]  (!%p1301_p11), %s1308_s12, 128, %s321_s18, %s309_s15  }
  0x57   : > { %329 = sbr.rel (%p1244_p8) target bundleno = 342 (0x156), region = 44  ;;  %s1327_s16 = sand.u32 (!%p1244_p8), 1, %s1126_s25  }
  0x58   : > { %s1330_s22 = sshll.u32 (!%p1244_p8), %s1327_s16, 3  ;;  %s332_s1 = scalar_lea.sflag (!%p1244_p8), [#allocation3], %s1327_s16 }
  0x59   : > { %s335_s8 = scalar_lea.vmem (!%p1244_p8), [#allocation2], %s1330_s22 }
  0x5c   : > { %1097 = dma.done.wait (%p1234_p4), %s332_s1, 128  }
  0x5d   : > { %1099 = vsyncadd (%p1234_p4), %s332_s1, 4294967168  ;;  %s340_s2 = sand.u32 1, %s1225_s30   ;;  %s344_s12 = scalar_lea.vmem [#allocation5], %s1330_s22 }
  0x5e   : > { %s341_s11 = scalar_lea.sflag [#allocation6], %s340_s2 }
  0x5f   : > { %1101 = dma.done.wait (%p1234_p4), %s341_s11, 128  }
  0x60   : > { %1103 = vsyncadd (%p1234_p4), %s341_s11, 4294967168  ;;  %p1474_p8 = scmp.eq.s32.totalorder %s1225_s30, 0 }
  0x62   : > { %1105 = dma.done.wait (%p1474_p8), [#allocation6], 512   ;;  %p1475_p11 = pmov %p1474_p8 }
  0x63   : > { %p1476_p0 = pmov %p1474_p8 }
  0x64   : > { %1107 = vsyncadd (%p1475_p11), [#allocation6], 4294966784 }
  0x65   : > { %1109 = dma.done.wait (%p1476_p0), [#allocation9], 512   ;;  %p1477_p12 = pmov %p1476_p0 }
  0x66   : > { %v1150_v0 = vmov 0.0   ;;  %vm1151_vm0 = vmmov 0   ;;  %v397_v1 = vld [vmem:[#allocation7 + $0x18] sm:$0xff]  ;;  %v396_v3 = vld [vmem:[#allocation7 + $0x10] sm:$0xff]  ;;  %v395_v5 = vld [vmem:[#allocation7 + $0x8] sm:$0xff]  ;;  %vm405_vm1 = vcmask 261120  }
  0x67   : > { %1111 = vsyncadd (%p1477_p12), [#allocation9], 4294966784  ;;  %793 = vmatprep.subr.mxu0 %v1150_v0  ;;  %804 = vmatprep.subr.mxu1 %v1150_v0  ;;  %v484_v2 = vld [vmem:[#allocation8 + $0x18] sm:$0xff]  ;;  %v483_v4 = vld [vmem:[#allocation8 + $0x10] sm:$0xff]  ;;  %s779_s30 = sshll.u32 %s1134_s27, 7  ;;  %s385_s17 = scalar_lea.vmem [#allocation10], %s1330_s22 }
  0x68   : > { %801 = vmatprep.mubr.msk.f32.mxu0 %vm1151_vm0, %v1150_v0  ;;  %812 = vmatprep.mubr.msk.f32.mxu1 %vm1151_vm0, %v1150_v0  ;;  %v482_v6 = vld [vmem:[#allocation8 + $0x8] sm:$0xff]  ;;  %v394_v7 = vld [vmem:[#allocation7] sm:$0xff]  ;;  %v480_v10 = vld [vmem:[%s344_s12] sm:$0xff]  ;;  %s586_s18 = sshll.u32 %s385_s17, 4  ;;  %s392_s15 = scalar_lea.vmem [#allocation11], %s1330_s22  ;;  %s1372_s18 = int_to_ptr.vmem [resolvable:$true] %s586_s18 }
  0x69   : > { %794 = vmatpush3.msra.mxu0 %v397_v1  ;;  %805 = vmatpush3.msra.mxu1 %v484_v2  ;;  %v481_v8 = vld [vmem:[#allocation8] sm:$0xff]  ;;  %s600_s0 = sshll.u32 %s392_s15, 4  ;;  %s1370_s27 = scalar_lea.hbm %s1454_s6, %s779_s30  ;;  %s1379_s0 = int_to_ptr.vmem [resolvable:$true] %s600_s0 }
  0x6a   : > { %795 = vmatprep.subr.mxu0 %v1150_v0  ;;  %806 = vmatprep.subr.mxu1 %v1150_v0  ;;  %v393_v9 = vld [vmem:[%s335_s8] sm:$0xff]  ;;  %s1377_s8 = scalar_lea.hbm %s1455_s7, %s779_s30  ;;  %s567_s2 = scalar_lea.sflag [#allocation4], %s1327_s16 }
  0x6b   : > { %796 = vmatpush3.msra.mxu0 %v396_v3  ;;  %807 = vmatpush3.msra.mxu1 %v483_v4  ;;  %v773_v11 = vld [vmem:[%s1451_s3] ss:$0 sm:$0xff]  ;;  %s1020_s11 = scalar_lea.vmem %s1372_s18, 128  ;;  %s1152_s12 = smov [#allocation10]  }
  0x6c   : > { %797 = vmatprep.subr.mxu0 %v1150_v0  ;;  %808 = vmatprep.subr.mxu1 %v1150_v0  ;;  %v775_v12 = vld [vmem:[%s1453_s5] ss:$0 sm:$0xff]  ;;  %p1021_p4 = scmp.ne.s32.totalorder %s1372_s18, %s1020_s11  ;;  %s1024_s9 = sshll.u32 %s1152_s12, 4  ;;  %s1025_s9 = int_to_ptr.vmem [resolvable:$false] %s1024_s9 }
  0x6d   : > { %798 = vmatpush3.msra.mxu0 %v395_v5  ;;  %809 = vmatpush3.msra.mxu1 %v482_v6  ;;  %s1026_s13 = scalar_lea.vmem %s1025_s9, 256  ;;  %p1027_p13 = scmp.lt.s32.totalorder %s1372_s18, %s1025_s9 }
  0x6e   : > { %799 = vmatprep.subr.mxu0 %v1150_v0  ;;  %810 = vmatprep.subr.mxu1 %v1150_v0  ;;  %p1022_p3 = pnand %p1021_p4, %p1285_p9  ;;  %p1028_p5 = scmp.lt.s32.totalorder %s1026_s13, %s1020_s11 }
  0x6f   : > { %800 = vmatpush3.msra.mxu0 %v394_v7  ;;  %811 = vmatpush3.msra.mxu1 %v481_v8 }
  0x70   : > { %802 = vmatmul.mubr.msk.f32.vlgmr.msra.gmra.mxu0 %vm405_vm1, %v393_v9  ;;  %813 = vmatmul.mubr.msk.f32.vlgmr.msra.gmra.mxu1 %vm405_vm1, %v480_v10  ;;  %p1023_p7 = pneg %p1022_p3  ;;  %p1029_p10 = por %p1028_p5, %p1027_p13 }
  0x72   : > { %p1030_p1 = pnand %p1029_p10, %p1023_p7 }
 0x130   : > { %v475_v13 = vpop.f32.mrf.mxu0  ;;  %v561_v14 = vpop.f32.mrf.mxu1 }
 0x131   : > { %v476_v15 = vadd.f32 %v773_v11, %v475_v13  ;;  %v562_v16 = vadd.f32 %v775_v12, %v561_v14 }
 0x132   : > { %v803_v17 = vpop.f32.mrf.mxu0  ;;  %v814_v18 = vpop.f32.mrf.mxu1 }
 0x133   : > { %479 = vst.msk [vmem:[%s385_s17] sm:$0xff] %vm405_vm1, %v476_v15  ;;  %565 = vst.msk [vmem:[%s392_s15] sm:$0xff] %vm405_vm1, %v562_v16 }
 0x134   : > { %1033 = shalt.err (!%p1030_p1)
}
 0x135   : > { %s1034_s30 = scalar_lea.hbm %s1370_s27, 128  ;;  %s1038_s17 = scalar_lea.hbm %s1454_s6, 256 }
 0x136   : > { %p1035_p2 = scmp.ne.s32.totalorder %s1370_s27, %s1034_s30  ;;  %p1039_p11 = scmp.lt.s32.totalorder %s1370_s27, %s1454_s6 }
 0x137   : > { %p1040_p0 = scmp.lt.s32.totalorder %s1038_s17, %s1034_s30 }
 0x138   : > { %p1036_p6 = pnand %p1035_p2, %p1285_p9 }
 0x139   : > { %p1041_p12 = por %p1040_p0, %p1039_p11 }
 0x13a   : > { %p1037_p8 = pneg %p1036_p6 }
 0x13c   : > { %p1042_p4 = pnand %p1041_p12, %p1037_p8 }
 0x13e   : > { %1045 = shalt.err (!%p1042_p4)
}
 0x13f   : > { %827 = dma.vmem_to_hbm [thread:$0]  (%p1285_p9), %s1372_s18, 128, %s1370_s27, %s567_s2  }
 0x140   : > { %s572_s21 = scalar_lea.sflag [#allocation12], %s1327_s16  ;;  %s1046_s1 = scalar_lea.vmem %s1379_s0, 128 }
 0x141   : > { %p1047_p3 = scmp.ne.s32.totalorder %s1379_s0, %s1046_s1  ;;  %s1153_s22 = smov [#allocation11]  }
 0x142   : > { %s1050_s11 = sshll.u32 %s1153_s22, 4  ;;  %s1051_s11 = int_to_ptr.vmem [resolvable:$false] %s1050_s11 }
 0x143   : > { %p1048_p7 = pnand %p1047_p3, %p1285_p9  ;;  %s1052_s12 = scalar_lea.vmem %s1051_s11, 256 }
 0x144   : > { %p1053_p5 = scmp.lt.s32.totalorder %s1379_s0, %s1051_s11  ;;  %p1054_p10 = scmp.lt.s32.totalorder %s1052_s12, %s1046_s1 }
 0x145   : > { %p1049_p13 = pneg %p1048_p7 }
 0x146   : > { %p1055_p1 = por %p1054_p10, %p1053_p5 }
 0x148   : > { %p1056_p2 = pnand %p1055_p1, %p1049_p13 }
 0x14a   : > { %1059 = shalt.err (!%p1056_p2)
}
 0x14b   : > { %s1060_s18 = scalar_lea.hbm %s1377_s8, 128  ;;  %s1064_s2 = scalar_lea.hbm %s1455_s7, 256 }
 0x14c   : > { %p1061_p6 = scmp.ne.s32.totalorder %s1377_s8, %s1060_s18  ;;  %p1065_p0 = scmp.lt.s32.totalorder %s1377_s8, %s1455_s7 }
 0x14d   : > { %p1066_p12 = scmp.lt.s32.totalorder %s1064_s2, %s1060_s18 }
 0x14e   : > { %p1062_p8 = pnand %p1061_p6, %p1285_p9 }
 0x14f   : > { %p1067_p4 = por %p1066_p12, %p1065_p0 }
 0x150   : > { %p1063_p11 = pneg %p1062_p8 }
 0x152   : > { %p1068_p3 = pnand %p1067_p4, %p1063_p11 }
 0x154   : > { %1071 = shalt.err (!%p1068_p3)
}
 0x155   : > { %828 = dma.vmem_to_hbm [thread:$0]  (%p1285_p9), %s1379_s0, 128, %s1377_s8, %s572_s21  }
 0x156 PF: > { %s612_s30 = sand.u32 1, %s1122_s24   ;;  %p1478_p7 = scmp.ne.s32.totalorder %s1463_s10, 0 }
 0x157   : > { %p1479_p13 = scmp.ge.s32.totalorder %s1142_s29, 2  ;;  %s613_s23 = scalar_lea.sflag [#allocation4], %s612_s30 }
 0x159   : > { %p846_p5 = pnand %p1479_p13, %p1478_p7 }
 0x15b   : > { %p847_p10 = pneg %p846_p5 }
 0x15d   : > { %1113 = dma.done.wait (%p847_p10), %s613_s23, 128  }
 0x15e   : > { %1115 = vsyncadd (%p847_p10), %s613_s23, 4294967168  ;;  %s622_s4 = scalar_lea.sflag [#allocation12], %s612_s30 }
 0x15f   : > { %1117 = dma.done.wait (%p847_p10), %s622_s4, 128  }
 0x160   : > { %1119 = vsyncadd (%p847_p10), %s622_s4, 4294967168  ;;  %s31_s29 = sadd.s32 1, %s1142_s29   ;;  %s1480_s14 = sld [smem:[#allocation19_spill]] }
 0x161   : > { %p28_p1 = scmp.ge.s32.totalorder %s31_s29, 4   ;;  %s1481_s24 = smov %s1126_s25 }
 0x162   : > { %s1482_s25 = smov %s1130_s26  ;;  %s1483_s26 = smov %s1294_s19 }
 0x163   : > { %s1484_s27 = smov %s1138_s28  ;;  %30 = sbr.rel (!%p28_p1) target bundleno = 16 (0x10), region = 127 }
 0x166   : > { %s1485_s28 = smov %s1480_s14 }
 0x168   :  { %627 = vsyncpa [#allocation3], 1 }
 0x169   :  { %629 = vsyncpa [#allocation3 + $0x1], 1 }
 0x16a   :  { %630 = vsyncpa [#allocation6], 1 }
 0x16b   :  { %632 = vsyncpa [#allocation6 + $0x1], 1 }
 0x16c   :  { %633 = vsyncpa [#allocation9], 1 }
 0x16d   :  { %634 = vsyncpa [#allocation4], 1 }
 0x16e   :  { %636 = vsyncpa [#allocation4 + $0x1], 1 }
 0x16f   :  { %637 = vsyncpa [#allocation12], 1 }
 0x170   :  { %639 = vsyncpa [#allocation12 + $0x1], 1 }

// kernel: tpu_custom_call.1
= control target key start
LH: loop header
LB: loop body
LE: loop exit
PB: predicated region body
PF: predicated region fallthrough
CT: control target
= control target key end

     0   :  { %s1448_s0 = inlined_call_operand.hbm [shape: f32[2,8,32], index: 0, kind: input, shape index: {}]   ;;  %s1449_s1 = inlined_call_operand.hbm [shape: f32[2,8,32], index: 1, kind: input, shape index: {}]   ;;  %s1450_s2 = inlined_call_operand.hbm [shape: f32[32,32], index: 2, kind: input, shape index: {}]   ;;  %s1451_s3 = inlined_call_operand.vmem [shape: f32[1,32], index: 3, kind: input, shape index: {}]   ;;  %s1452_s4 = inlined_call_operand.hbm [shape: f32[32,32], index: 4, kind: input, shape index: {}]   ;;  %s1453_s5 = inlined_call_operand.vmem [shape: f32[1,32], index: 5, kind: input, shape index: {}]   ;;  %s1454_s6 = inlined_call_operand.hbm [shape: f32[2,8,32], index: 6, kind: output, shape index: {0}]   ;;  %s1455_s7 = inlined_call_operand.hbm [shape: f32[2,8,32], index: 7, kind: output, shape index: {1}]  }
   0x1   :  { %1458 = sst [smem:[#allocation20_spill]] %s1448_s0 }
   0x2   :  { %1459 = sst [smem:[#allocation21_spill]] %s1449_s1 }
   0x3   :  { %1460 = sst [smem:[#allocation22_spill]] %s1450_s2 }
   0x4   :  { %1461 = sst [smem:[#allocation23_spill]] %s1452_s4 }
   0x5   :  { %13 = vsyncpa [#allocation3], 0 }
   0x6   :  { %15 = vsyncpa [#allocation3 + $0x1], 0 }
   0x7   :  { %16 = vsyncpa [#allocation6], 0 }
   0x8   :  { %18 = vsyncpa [#allocation6 + $0x1], 0 }
   0x9   :  { %19 = vsyncpa [#allocation9], 0 }
   0xa   :  { %20 = vsyncpa [#allocation4], 0 }
   0xb   :  { %22 = vsyncpa [#allocation4 + $0x1], 0 }
   0xc   :  { %23 = vsyncpa [#allocation12], 0 }
   0xd   :  { %25 = vsyncpa [#allocation12 + $0x1], 0  ;;  %s1194_s24 = smov 0   ;;  %s1196_s25 = smov 0  }
   0xe   :  { %s1198_s26 = smov 0   ;;  %s1200_s27 = smov 0  }
   0xf   :  { %s1202_s28 = smov 0   ;;  %s1204_s29 = smov 0  }
  0x10 LB: > { %s1225_s30 = sadd.s32 4294967295, %s1142_s29   ;;  %s757_s8 = sadd.s32 4294967294, %s1142_s29   ;;  %s1142_s29 = sphi %s1204_s29, %s31_s29   ;;  %s1138_s28 = sphi %s1202_s28, %s1485_s28   ;;  %s1134_s27 = sphi %s1200_s27, %s1484_s27   ;;  %s1130_s26 = sphi %s1198_s26, %s1483_s26   ;;  %s1126_s25 = sphi %s1196_s25, %s1482_s25   ;;  %s1122_s24 = sphi %s1194_s24, %s1481_s24  }
  0x11   : > { %p65_p0 = scmp.ne.s32.totalorder %s1126_s25, %s1122_s24  ;;  %p1456_p1 = scmp.eq.s32.totalorder %s1225_s30, 0 }
  0x12   : > { %p209_p3 = scmp.eq.s32.totalorder %s757_s8, 1  ;;  %p758_p5 = scmp.ge.s32.totalorder %s1142_s29, 1 }
  0x13   : > { %p1234_p4 = por %p1456_p1, %p65_p0  ;;  %p244_p7 = scmp.lt.s32.totalorder %s1142_s29, 3 }
  0x14   : > { %p1239_p6 = por %p209_p3, %p65_p0  ;;  %s1144_s12 = smov [#allocation7]  }
  0x15   : > { %p1244_p8 = pnand %p758_p5, %p244_p7  ;;  %s256_s13 = sshll.u32 %s1144_s12, 4  ;;  %s257_s13 = int_to_ptr.vmem [resolvable:$true] %s256_s13 }
  0x16   : > { %s1463_s10 = scalar_select %p1239_p6, 1, 0 }
  0x17   : > { %p831_p9 = pneg %p1244_p8  ;;  %s1145_s15 = smov [#allocation8]  }
  0x18   : > { %s272_s16 = sshll.u32 %s1145_s15, 4  ;;  %s923_s17 = scalar_lea.vmem %s257_s13, 512  ;;  %s273_s16 = int_to_ptr.vmem [resolvable:$true] %s272_s16 }
  0x19   : > { %p1253_p11 = pnand %p831_p9, %p1456_p1  ;;  %p924_p13 = scmp.ne.s32.totalorder %s257_s13, %s923_s17 }
  0x1a   : > { %p931_p5 = scmp.lt.s32.totalorder %s257_s13, %s257_s13  ;;  %p932_p7 = scmp.lt.s32.totalorder %s923_s17, %s923_s17 }
  0x1b   : > { %p914_p12 = pneg %p1253_p11 }
  0x1c   : > { %p933_p10 = por %p932_p7, %p931_p5 }
  0x1d   : > { %p926_p0 = pnand %p924_p13, %p914_p12 }
  0x1f   : > { %p927_p3 = pneg %p926_p0 }
  0x21   : > { %p934_p9 = pnand %p933_p10, %p927_p3 }
  0x23   : > { %937 = shalt.err (!%p934_p9)
}
  0x24   : > { %s1146_s18 = smov 128   ;;  %s1147_s19 = smov 8  }
  0x25   : > { %s1466_s2 = sld [smem:[#allocation22_spill]]  ;;  %s949_s22 = scalar_lea.vmem %s273_s16, 512 }
  0x26   : > { %p950_p1 = scmp.ne.s32.totalorder %s273_s16, %s949_s22  ;;  %p957_p2 = scmp.lt.s32.totalorder %s273_s16, %s273_s16 }
  0x27   : > { %p958_p6 = scmp.lt.s32.totalorder %s949_s22, %s949_s22 }
  0x28   : > { %p952_p13 = pnand %p950_p1, %p914_p12 }
  0x29   : > { %p959_p5 = por %p958_p6, %p957_p2 }
  0x2a   : > { %p953_p0 = pneg %p952_p13 }
  0x2b   : > { %834 = dma.hbm_to_vmem [thread:$0]  (!%p1253_p11), %s1466_s2, 512, %s257_s13, [#allocation6], %s1146_s18, %s1146_s18, %s1147_s19  }
  0x2c   : > { %p960_p10 = pnand %p959_p5, %p953_p0 }
  0x2e   : > { %963 = shalt.err (!%p960_p10)
}
  0x2f   : > { %s1467_s4 = sld [smem:[#allocation23_spill]]  ;;  %s43_s12 = sadd.s32 1, %s1138_s28 }
  0x30   : > { %s52_s13 = sadd.s32 1, %s1130_s26  ;;  %p45_p1 = scmp.ge.s32.totalorder %s43_s12, 2 }
  0x31   : > { %p59_p2 = scmp.ne.s32.totalorder %s1130_s26, %s1126_s25  ;;  %p60_p6 = scmp.eq.s32.totalorder %s1142_s29, 0 }
  0x32   : > { %p854_p12 = scmp.lt.s32.totalorder %s1142_s29, 2  ;;  %s1487_s12 = smov (%p45_p1, %s43_s12), 0 }
  0x33   : > { %1468 = sst [smem:[#allocation19_spill]] %s1487_s12  ;;  %p61_p3 = por %p60_p6, %p59_p2 }
  0x34   : > { %p1469_p7 = scmp.eq.s32.totalorder %s1225_s30, 1  ;;  %s47_s15 = ssub.s32 %s1138_s28, %s1487_s12 }
  0x35   : > { %837 = dma.hbm_to_vmem [thread:$0]  (!%p1253_p11), %s1467_s4, 512, %s273_s16, [#allocation9], %s1146_s18, %s1146_s18, %s1147_s19  }
  0x36   : > { %p1285_p9 = por %p1469_p7, %p59_p2  ;;  %s289_s17 = sand.u32 1, %s1130_s26  }
  0x37   : > { %p50_p13 = scmp.eq.s32.totalorder %s47_s15, 0  ;;  %s762_s16 = sshll.u32 %s289_s17, 3 }
  0x38   : > { %s763_s18 = sshll.u32 %s1138_s28, 7  ;;  %s1471_s0 = sld [smem:[#allocation20_spill]] }
  0x39   : > { %s1294_s19 = scalar_select %p50_p13, %s1130_s26, %s52_s13  }
  0x3a   : > { %s293_s23 = scalar_lea.vmem [#allocation2], %s762_s16  ;;  %p1301_p11 = pnand %p854_p12, %p61_p3 }
  0x3b   : > { %s301_s8 = sshll.u32 %s293_s23, 4  ;;  %s1473_s1 = sld [smem:[#allocation21_spill]]  ;;  %s302_s8 = int_to_ptr.vmem [resolvable:$true] %s301_s8 }
  0x3c   : > { %s290_s13 = scalar_lea.sflag [#allocation3], %s289_s17  ;;  %p966_p0 = pneg %p1301_p11 }
  0x3d   : > { %s977_s20 = scalar_lea.vmem %s302_s8, 128  ;;  %s1148_s21 = smov [#allocation2]  }
  0x3e   : > { %s299_s22 = scalar_lea.hbm %s1471_s0, %s763_s18  ;;  %p978_p5 = scmp.ne.s32.totalorder %s302_s8, %s977_s20 }
  0x3f   : > { %s982_s23 = sshll.u32 %s1148_s21, 4  ;;  %s983_s23 = int_to_ptr.vmem [resolvable:$false] %s982_s23 }
  0x40   : > { %p980_p10 = pnand %p978_p5, %p966_p0  ;;  %s984_s0 = scalar_lea.vmem %s983_s23, 256 }
  0x41   : > { %s1308_s12 = scalar_lea.hbm %s1473_s1, %s763_s18  ;;  %p985_p2 = scmp.lt.s32.totalorder %s302_s8, %s983_s23 }
  0x42   : > { %p981_p1 = pneg %p980_p10  ;;  %p986_p6 = scmp.lt.s32.totalorder %s984_s0, %s977_s20 }
  0x44   : > { %p987_p12 = por %p986_p6, %p985_p2 }
  0x46   : > { %p988_p3 = pnand %p987_p12, %p981_p1 }
  0x48   : > { %991 = shalt.err (!%p988_p3)
}
  0x49   : > { %841 = dma.hbm_to_vmem [thread:$0]  (!%p1301_p11), %s299_s22, 128, %s302_s8, %s290_s13  }
  0x4a   : > { %s308_s4 = sand.u32 1, %s1142_s29   ;;  %s312_s17 = scalar_lea.vmem [#allocation5], %s762_s16 }
  0x4b   : > { %s320_s18 = sshll.u32 %s312_s17, 4  ;;  %s309_s15 = scalar_lea.sflag [#allocation6], %s308_s4  ;;  %s321_s18 = int_to_ptr.vmem [resolvable:$true] %s320_s18 }
  0x4c   : > { %s1005_s1 = scalar_lea.vmem %s321_s18, 128  ;;  %s1149_s0 = smov [#allocation5]  }
  0x4d   : > { %p1006_p7 = scmp.ne.s32.totalorder %s321_s18, %s1005_s1  ;;  %s1010_s20 = sshll.u32 %s1149_s0, 4  ;;  %s1011_s20 = int_to_ptr.vmem [resolvable:$false] %s1010_s20 }
  0x4e   : > { %s1012_s21 = scalar_lea.vmem %s1011_s20, 256  ;;  %p1013_p10 = scmp.lt.s32.totalorder %s321_s18, %s1011_s20 }
  0x4f   : > { %p1008_p13 = pnand %p1006_p7, %p966_p0  ;;  %p1014_p1 = scmp.lt.s32.totalorder %s1012_s21, %s1005_s1 }
  0x51   : > { %p1009_p5 = pneg %p1008_p13  ;;  %p1015_p2 = por %p1014_p1, %p1013_p10 }
  0x53   : > { %p1016_p6 = pnand %p1015_p2, %p1009_p5 }
  0x55   : > { %1019 = shalt.err (!%p1016_p6)
}
  0x56   : > { %844 = dma.hbm_to_vmem [thread:$0]  (!%p1301_p11), %s1308_s12, 128, %s321_s18, %s309_s15  }
  0x57   : > { %329 = sbr.rel (%p1244_p8) target bundleno = 342 (0x156), region = 44  ;;  %s1327_s16 = sand.u32 (!%p1244_p8), 1, %s1126_s25  }
  0x58   : > { %s1330_s22 = sshll.u32 (!%p1244_p8), %s1327_s16, 3  ;;  %s332_s1 = scalar_lea.sflag (!%p1244_p8), [#allocation3], %s1327_s16 }
  0x59   : > { %s335_s8 = scalar_lea.vmem (!%p1244_p8), [#allocation2], %s1330_s22 }
  0x5c   : > { %1097 = dma.done.wait (%p1234_p4), %s332_s1, 128  }
  0x5d   : > { %1099 = vsyncadd (%p1234_p4), %s332_s1, 4294967168  ;;  %s340_s2 = sand.u32 1, %s1225_s30   ;;  %s344_s12 = scalar_lea.vmem [#allocation5], %s1330_s22 }
  0x5e   : > { %s341_s11 = scalar_lea.sflag [#allocation6], %s340_s2 }
  0x5f   : > { %1101 = dma.done.wait (%p1234_p4), %s341_s11, 128  }
  0x60   : > { %1103 = vsyncadd (%p1234_p4), %s341_s11, 4294967168  ;;  %p1474_p8 = scmp.eq.s32.totalorder %s1225_s30, 0 }
  0x62   : > { %1105 = dma.done.wait (%p1474_p8), [#allocation6], 512   ;;  %p1475_p11 = pmov %p1474_p8 }
  0x63   : > { %p1476_p0 = pmov %p1474_p8 }
  0x64   : > { %1107 = vsyncadd (%p1475_p11), [#allocation6], 4294966784 }
  0x65   : > { %1109 = dma.done.wait (%p1476_p0), [#allocation9], 512   ;;  %p1477_p12 = pmov %p1476_p0 }
  0x66   : > { %v1150_v0 = vmov 0.0   ;;  %vm1151_vm0 = vmmov 0   ;;  %v397_v1 = vld [vmem:[#allocation7 + $0x18] sm:$0xff]  ;;  %v396_v3 = vld [vmem:[#allocation7 + $0x10] sm:$0xff]  ;;  %v395_v5 = vld [vmem:[#allocation7 + $0x8] sm:$0xff]  ;;  %vm405_vm1 = vcmask 261120  }
  0x67   : > { %1111 = vsyncadd (%p1477_p12), [#allocation9], 4294966784  ;;  %793 = vmatprep.subr.mxu0 %v1150_v0  ;;  %804 = vmatprep.subr.mxu1 %v1150_v0  ;;  %v484_v2 = vld [vmem:[#allocation8 + $0x18] sm:$0xff]  ;;  %v483_v4 = vld [vmem:[#allocation8 + $0x10] sm:$0xff]  ;;  %s779_s30 = sshll.u32 %s1134_s27, 7  ;;  %s385_s17 = scalar_lea.vmem [#allocation10], %s1330_s22 }
  0x68   : > { %801 = vmatprep.mubr.msk.f32.mxu0 %vm1151_vm0, %v1150_v0  ;;  %812 = vmatprep.mubr.msk.f32.mxu1 %vm1151_vm0, %v1150_v0  ;;  %v482_v6 = vld [vmem:[#allocation8 + $0x8] sm:$0xff]  ;;  %v394_v7 = vld [vmem:[#allocation7] sm:$0xff]  ;;  %v480_v10 = vld [vmem:[%s344_s12] sm:$0xff]  ;;  %s586_s18 = sshll.u32 %s385_s17, 4  ;;  %s392_s15 = scalar_lea.vmem [#allocation11], %s1330_s22  ;;  %s1372_s18 = int_to_ptr.vmem [resolvable:$true] %s586_s18 }
  0x69   : > { %794 = vmatpush3.msra.mxu0 %v397_v1  ;;  %805 = vmatpush3.msra.mxu1 %v484_v2  ;;  %v481_v8 = vld [vmem:[#allocation8] sm:$0xff]  ;;  %s600_s0 = sshll.u32 %s392_s15, 4  ;;  %s1370_s27 = scalar_lea.hbm %s1454_s6, %s779_s30  ;;  %s1379_s0 = int_to_ptr.vmem [resolvable:$true] %s600_s0 }
  0x6a   : > { %795 = vmatprep.subr.mxu0 %v1150_v0  ;;  %806 = vmatprep.subr.mxu1 %v1150_v0  ;;  %v393_v9 = vld [vmem:[%s335_s8] sm:$0xff]  ;;  %s1377_s8 = scalar_lea.hbm %s1455_s7, %s779_s30  ;;  %s567_s2 = scalar_lea.sflag [#allocation4], %s1327_s16 }
  0x6b   : > { %796 = vmatpush3.msra.mxu0 %v396_v3  ;;  %807 = vmatpush3.msra.mxu1 %v483_v4  ;;  %v773_v11 = vld [vmem:[%s1451_s3] ss:$0 sm:$0xff]  ;;  %s1020_s11 = scalar_lea.vmem %s1372_s18, 128  ;;  %s1152_s12 = smov [#allocation10]  }
  0x6c   : > { %797 = vmatprep.subr.mxu0 %v1150_v0  ;;  %808 = vmatprep.subr.mxu1 %v1150_v0  ;;  %v775_v12 = vld [vmem:[%s1453_s5] ss:$0 sm:$0xff]  ;;  %p1021_p4 = scmp.ne.s32.totalorder %s1372_s18, %s1020_s11  ;;  %s1024_s9 = sshll.u32 %s1152_s12, 4  ;;  %s1025_s9 = int_to_ptr.vmem [resolvable:$false] %s1024_s9 }
  0x6d   : > { %798 = vmatpush3.msra.mxu0 %v395_v5  ;;  %809 = vmatpush3.msra.mxu1 %v482_v6  ;;  %s1026_s13 = scalar_lea.vmem %s1025_s9, 256  ;;  %p1027_p13 = scmp.lt.s32.totalorder %s1372_s18, %s1025_s9 }
  0x6e   : > { %799 = vmatprep.subr.mxu0 %v1150_v0  ;;  %810 = vmatprep.subr.mxu1 %v1150_v0  ;;  %p1022_p3 = pnand %p1021_p4, %p1285_p9  ;;  %p1028_p5 = scmp.lt.s32.totalorder %s1026_s13, %s1020_s11 }
  0x6f   : > { %800 = vmatpush3.msra.mxu0 %v394_v7  ;;  %811 = vmatpush3.msra.mxu1 %v481_v8 }
  0x70   : > { %802 = vmatmul.mubr.msk.f32.vlgmr.msra.gmra.mxu0 %vm405_vm1, %v393_v9  ;;  %813 = vmatmul.mubr.msk.f32.vlgmr.msra.gmra.mxu1 %vm405_vm1, %v480_v10  ;;  %p1023_p7 = pneg %p1022_p3  ;;  %p1029_p10 = por %p1028_p5, %p1027_p13 }
  0x72   : > { %p1030_p1 = pnand %p1029_p10, %p1023_p7 }
 0x130   : > { %v475_v13 = vpop.f32.mrf.mxu0  ;;  %v561_v14 = vpop.f32.mrf.mxu1 }
 0x131   : > { %v476_v15 = vadd.f32 %v773_v11, %v475_v13  ;;  %v562_v16 = vadd.f32 %v775_v12, %v561_v14 }
 0x132   : > { %v803_v17 = vpop.f32.mrf.mxu0  ;;  %v814_v18 = vpop.f32.mrf.mxu1 }
 0x133   : > { %479 = vst.msk [vmem:[%s385_s17] sm:$0xff] %vm405_vm1, %v476_v15  ;;  %565 = vst.msk [vmem:[%s392_s15] sm:$0xff] %vm405_vm1, %v562_v16 }
 0x134   : > { %1033 = shalt.err (!%p1030_p1)
}
 0x135   : > { %s1034_s30 = scalar_lea.hbm %s1370_s27, 128  ;;  %s1038_s17 = scalar_lea.hbm %s1454_s6, 256 }
 0x136   : > { %p1035_p2 = scmp.ne.s32.totalorder %s1370_s27, %s1034_s30  ;;  %p1039_p11 = scmp.lt.s32.totalorder %s1370_s27, %s1454_s6 }
 0x137   : > { %p1040_p0 = scmp.lt.s32.totalorder %s1038_s17, %s1034_s30 }
 0x138   : > { %p1036_p6 = pnand %p1035_p2, %p1285_p9 }
 0x139   : > { %p1041_p12 = por %p1040_p0, %p1039_p11 }
 0x13a   : > { %p1037_p8 = pneg %p1036_p6 }
 0x13c   : > { %p1042_p4 = pnand %p1041_p12, %p1037_p8 }
 0x13e   : > { %1045 = shalt.err (!%p1042_p4)
}
 0x13f   : > { %827 = dma.vmem_to_hbm [thread:$0]  (%p1285_p9), %s1372_s18, 128, %s1370_s27, %s567_s2  }
 0x140   : > { %s572_s21 = scalar_lea.sflag [#allocation12], %s1327_s16  ;;  %s1046_s1 = scalar_lea.vmem %s1379_s0, 128 }
 0x141   : > { %p1047_p3 = scmp.ne.s32.totalorder %s1379_s0, %s1046_s1  ;;  %s1153_s22 = smov [#allocation11]  }
 0x142   : > { %s1050_s11 = sshll.u32 %s1153_s22, 4  ;;  %s1051_s11 = int_to_ptr.vmem [resolvable:$false] %s1050_s11 }
 0x143   : > { %p1048_p7 = pnand %p1047_p3, %p1285_p9  ;;  %s1052_s12 = scalar_lea.vmem %s1051_s11, 256 }
 0x144   : > { %p1053_p5 = scmp.lt.s32.totalorder %s1379_s0, %s1051_s11  ;;  %p1054_p10 = scmp.lt.s32.totalorder %s1052_s12, %s1046_s1 }
 0x145   : > { %p1049_p13 = pneg %p1048_p7 }
 0x146   : > { %p1055_p1 = por %p1054_p10, %p1053_p5 }
 0x148   : > { %p1056_p2 = pnand %p1055_p1, %p1049_p13 }
 0x14a   : > { %1059 = shalt.err (!%p1056_p2)
}
 0x14b   : > { %s1060_s18 = scalar_lea.hbm %s1377_s8, 128  ;;  %s1064_s2 = scalar_lea.hbm %s1455_s7, 256 }
 0x14c   : > { %p1061_p6 = scmp.ne.s32.totalorder %s1377_s8, %s1060_s18  ;;  %p1065_p0 = scmp.lt.s32.totalorder %s1377_s8, %s1455_s7 }
 0x14d   : > { %p1066_p12 = scmp.lt.s32.totalorder %s1064_s2, %s1060_s18 }
 0x14e   : > { %p1062_p8 = pnand %p1061_p6, %p1285_p9 }
 0x14f   : > { %p1067_p4 = por %p1066_p12, %p1065_p0 }
 0x150   : > { %p1063_p11 = pneg %p1062_p8 }
 0x152   : > { %p1068_p3 = pnand %p1067_p4, %p1063_p11 }
 0x154   : > { %1071 = shalt.err (!%p1068_p3)
}
 0x155   : > { %828 = dma.vmem_to_hbm [thread:$0]  (%p1285_p9), %s1379_s0, 128, %s1377_s8, %s572_s21  }
 0x156 PF: > { %s612_s30 = sand.u32 1, %s1122_s24   ;;  %p1478_p7 = scmp.ne.s32.totalorder %s1463_s10, 0 }
 0x157   : > { %p1479_p13 = scmp.ge.s32.totalorder %s1142_s29, 2  ;;  %s613_s23 = scalar_lea.sflag [#allocation4], %s612_s30 }
 0x159   : > { %p846_p5 = pnand %p1479_p13, %p1478_p7 }
 0x15b   : > { %p847_p10 = pneg %p846_p5 }
 0x15d   : > { %1113 = dma.done.wait (%p847_p10), %s613_s23, 128  }
 0x15e   : > { %1115 = vsyncadd (%p847_p10), %s613_s23, 4294967168  ;;  %s622_s4 = scalar_lea.sflag [#allocation12], %s612_s30 }
 0x15f   : > { %1117 = dma.done.wait (%p847_p10), %s622_s4, 128  }
 0x160   : > { %1119 = vsyncadd (%p847_p10), %s622_s4, 4294967168  ;;  %s31_s29 = sadd.s32 1, %s1142_s29   ;;  %s1480_s14 = sld [smem:[#allocation19_spill]] }
 0x161   : > { %p28_p1 = scmp.ge.s32.totalorder %s31_s29, 4   ;;  %s1481_s24 = smov %s1126_s25 }
 0x162   : > { %s1482_s25 = smov %s1130_s26  ;;  %s1483_s26 = smov %s1294_s19 }
 0x163   : > { %s1484_s27 = smov %s1138_s28  ;;  %30 = sbr.rel (!%p28_p1) target bundleno = 16 (0x10), region = 127 }
 0x166   : > { %s1485_s28 = smov %s1480_s14 }
 0x168   :  { %627 = vsyncpa [#allocation3], 1 }
 0x169   :  { %629 = vsyncpa [#allocation3 + $0x1], 1 }
 0x16a   :  { %630 = vsyncpa [#allocation6], 1 }
 0x16b   :  { %632 = vsyncpa [#allocation6 + $0x1], 1 }
 0x16c   :  { %633 = vsyncpa [#allocation9], 1 }
 0x16d   :  { %634 = vsyncpa [#allocation4], 1 }
 0x16e   :  { %636 = vsyncpa [#allocation4 + $0x1], 1 }
 0x16f   :  { %637 = vsyncpa [#allocation12], 1 }
 0x170   :  { %639 = vsyncpa [#allocation12 + $0x1], 1 }

</bundles_post_ra>
